<compile_context>
chip_gen: v6e
topology: v6e:2x2x1
jax: 0.10.0
libtpu: 0.0.40
codegen_flags: <defaults>
</compile_context>

<pallas_src>
import functools

import jax
import jax.numpy as jnp
from jax import lax
from jax.experimental import pallas as pl
from jax.experimental.pallas import tpu as pltpu


def _round_up(x, m):
    return ((x + m - 1) // m) * m


# ----------------------------- Pallas kernels --------------------------------

def _complex_mm_kernel(p_ref, wt_ref, wb_ref, o_ref):
    """Single-K-block variant.

    p_ref : (2, tm, K)   [0]=real patches, [1]=imag patches   (bf16)
    wt_ref: (K, 2*Op)    [ wr | wi ]                           (bf16)
    wb_ref: (K, 2*Op)    [-wi | wr ]                           (bf16)
    o_ref : (tm, 2*Op)   [out_real | out_imag]
    """
    acc = jnp.dot(p_ref[0], wt_ref[...], preferred_element_type=jnp.float32)
    acc = acc + jnp.dot(p_ref[1], wb_ref[...], preferred_element_type=jnp.float32)
    o_ref[...] = acc.astype(o_ref.dtype)


def _complex_mm_ksplit_kernel(p_ref, wt_ref, wb_ref, o_ref, acc_ref):
    """K-tiled variant: f32 VMEM accumulator, init/finalize with pl.when."""
    k = pl.program_id(2)

    @pl.when(k == 0)
    def _():
        acc_ref[...] = jnp.zeros_like(acc_ref)

    acc_ref[...] += (
        jnp.dot(p_ref[0], wt_ref[...], preferred_element_type=jnp.float32)
        + jnp.dot(p_ref[1], wb_ref[...], preferred_element_type=jnp.float32))

    @pl.when(k == pl.num_programs(2) - 1)
    def _():
        o_ref[...] = acc_ref[...].astype(o_ref.dtype)


# ----------------------------- tiling helpers ---------------------------------

_SINGLE_BUFFER_MIN_BYTES = 4 << 20  # only drop the 2nd weight buffer when it's real VMEM


def _weight_nbuf(k_eff, two_op, resident):
    if resident and k_eff * two_op * 2 >= _SINGLE_BUFFER_MIN_BYTES:
        return 1
    return 2


def _weight_spec(shape, index_map, nbuf):
    """BlockSpec for a weight matrix; single-buffer it when grid-invariant & large."""
    if nbuf == 1:
        try:
            return pl.BlockSpec(shape, index_map, pipeline_mode=pl.Buffered(1))
        except Exception:  # pipeline_mode not available in this jax version
            pass
    return pl.BlockSpec(shape, index_map)


def _vmem_budget():
    """~3/4 of physical VMEM (v5e/v6e: 128 MiB -> 96 MiB, v7x per-core: 64 -> 48)."""
    try:
        cap = int(pltpu.get_tpu_info().vmem_capacity_bytes)
    except Exception:
        cap = 64 << 20  # assume the smallest (v7x per-core)
    return (cap * 3) // 4


def _vmem_estimate(tm, k_eff, two_op, store_itemsize, nbuf_w, ksplit):
    patch = 2 * (2 * tm * k_eff * 2)            # (re,im) bf16 tile, double-buffered
    wgt = nbuf_w * 2 * (k_eff * two_op * 2)     # two bf16 weight matrices
    outb = 2 * (tm * two_op * store_itemsize)   # output tile, double-buffered
    acc = tm * two_op * 4 if ksplit else 0      # f32 accumulator scratch
    return patch + wgt + outb + acc


def _pick_tk(K, max_tk):
    """Largest 128-multiple <= max_tk dividing K (avoids re-padding the patches);
    otherwise fall back to a fixed tile and zero-pad K."""
    max_tk = max(128, (max_tk // 128) * 128)
    for t in range(max_tk, 0, -128):
        if K % t == 0:
            return t
    return min(512, max_tk)


def _choose_tm(B, M, k_eff, two_op, store_itemsize, nbuf_w, ksplit, budget):
    """Largest M tile fitting the VMEM budget while keeping enough grid steps to
    pipeline (and to feed both TensorCores on v7x); never shrinks below 128 rows
    just to manufacture steps."""
    if M < 128:
        return M  # full-extent block (exempt from the (8,128) rule)
    cands = [t for t in (1024, 512, 256, 128) if t <= M]

    def fits(t):
        return _vmem_estimate(t, k_eff, two_op, store_itemsize, nbuf_w,
                              ksplit) <= budget

    for min_steps in (8, 4, 2, 1):
        for t in cands:
            steps = B * pl.cdiv(M, t)
            waste = pl.cdiv(M, t) * t - M
            if steps >= min_steps and waste <= t // 2 and fits(t):
                return t
    for t in cands:  # ignore the waste heuristic if nothing matched
        if fits(t):
            return t
    return 128


# ----------------------------- Pallas wrapper ---------------------------------

def _complex_mm_pallas(patches, w_top, w_bot, store_dtype, *, tm=None, tk=None):
    """patches: (B, 2, M, Kp) bf16; w_top/w_bot: (Kp, 2*Op) bf16.

    Returns (B, M, 2*Op) = [out_real | out_imag] in `store_dtype` (f32 accumulate).
    """
    B, two, M, Kp = patches.shape
    assert two == 2
    two_op = w_top.shape[1]
    store_itemsize = jnp.dtype(store_dtype).itemsize

    ksplit = tk is not None and tk < Kp
    k_eff = tk if ksplit else Kp
    n_k = Kp // tk if ksplit else 1
    nbuf_w = _weight_nbuf(k_eff, two_op, resident=not ksplit)

    budget = _vmem_budget()
    if tm is None:
        tm = _choose_tm(B, M, k_eff, two_op, store_itemsize, nbuf_w, ksplit, budget)
    n_m = pl.cdiv(M, tm)

    est = _vmem_estimate(tm, k_eff, two_op, store_itemsize, nbuf_w, ksplit)
    vmem_limit = int(min(budget, max(est + (16 << 20), 32 << 20)))

    cost = pl.CostEstimate(
        flops=4 * B * M * Kp * two_op,
        transcendentals=0,
        bytes_accessed=int(patches.size * patches.dtype.itemsize
                           + 2 * w_top.size * w_top.dtype.itemsize
                           + B * M * two_op * store_itemsize))

    if not ksplit:
        grid = (B, n_m)
        in_specs = [
            pl.BlockSpec((pl.Squeezed(), 2, tm, Kp), lambda b, i: (b, 0, i, 0)),
            _weight_spec((Kp, two_op), lambda b, i: (0, 0), nbuf_w),
            _weight_spec((Kp, two_op), lambda b, i: (0, 0), nbuf_w),
        ]
        out_specs = pl.BlockSpec((pl.Squeezed(), tm, two_op),
                                 lambda b, i: (b, i, 0))
        kernel = _complex_mm_kernel
        scratch = ()
        dim_sem = ("parallel", "parallel")
    else:
        grid = (B, n_m, n_k)
        in_specs = [
            pl.BlockSpec((pl.Squeezed(), 2, tm, tk), lambda b, i, k: (b, 0, i, k)),
            pl.BlockSpec((tk, two_op), lambda b, i, k: (k, 0)),
            pl.BlockSpec((tk, two_op), lambda b, i, k: (k, 0)),
        ]
        out_specs = pl.BlockSpec((pl.Squeezed(), tm, two_op),
                                 lambda b, i, k: (b, i, 0))
        kernel = _complex_mm_ksplit_kernel
        scratch = (pltpu.VMEM((tm, two_op), jnp.float32),)
        dim_sem = ("parallel", "parallel", "arbitrary")

    return pl.pallas_call(
        kernel,
        out_shape=jax.ShapeDtypeStruct((B, M, two_op), store_dtype),
        grid_spec=pltpu.PrefetchScalarGridSpec(
            num_scalar_prefetch=0,
            grid=grid,
            in_specs=in_specs,
            out_specs=out_specs,
            scratch_shapes=scratch),
        compiler_params=pltpu.CompilerParams(
            dimension_semantics=dim_sem,
            vmem_limit_bytes=vmem_limit),
        cost_estimate=cost,
    )(patches, w_top, w_bot)


# ------------------------------ JAX glue -------------------------------------

def conv2d_complex_forward(x, w_real, w_imag, *, stride=1, padding=0,
                           compute_dtype=jnp.bfloat16, store_dtype=None,
                           tm=None, k_split=2048, max_tk=1024):
    """Forward pass of Conv2dComplex.

    x       : [B, 2, C, H, W]
    w_real  : [O, C, KH, KW]   weight of conv_real (no bias)
    w_imag  : [O, C, KH, KW]   weight of conv_imag (no bias)
    returns : [B, 2, O, Ho, Wo]  (dtype of x)
    """
    assert x.shape[1] == 2
    B = x.shape[0]
    O, C, KH, KW = w_real.shape
    out_dtype = x.dtype
    store_dtype = out_dtype if store_dtype is None else store_dtype

    # im2col straight into channel-last layout: one XLA op, no extra transpose
    # pass over the KH*KW-times-blown patch tensor.  Cast to bf16 first so the
    # materialized patch bytes are halved (identity-kernel conv is exact).
    # Feature order of the patch dim is (c, kh, kw), matching w.reshape(O, C*KH*KW);
    # this is validated against the XLA conv reference in __main__.
    x2 = x.reshape(B * 2, C, x.shape[3], x.shape[4]).astype(compute_dtype)
    patches = lax.conv_general_dilated_patches(
        x2, filter_shape=(KH, KW), window_strides=(stride, stride),
        padding=((padding, padding), (padding, padding)),
        dimension_numbers=("NCHW", "OIHW", "NHWC"))
    _, Ho, Wo, K = patches.shape
    assert K == C * KH * KW
    M = Ho * Wo
    # Pure reshape (no copy): real/imag stay on a leading axis and are sliced
    # inside the kernel -> no pad/concat/split HBM passes over the patches.
    patches = patches.reshape(B, 2, M, K)

    # Output-channel padding: 2*Op is a multiple of 128 -> lane-dense, unmasked
    # output stores; 64-granularity halves padded columns/stores for small O.
    Op = _round_up(O, 64)
    if O > 256 and Op % 128 != 0:
        Op = _round_up(O, 128)  # keep 2*Op aligned to the 256-wide MXU for big O
    two_op = 2 * Op

    # K tiling (f32 accumulator in the kernel) once the contraction is large.
    if K > k_split:
        tk = _pick_tk(K, max_tk)
        Kp = _round_up(K, tk)
        if Kp != K:
            patches = jnp.pad(patches, ((0, 0), (0, 0), (0, 0), (0, Kp - K)))
    else:
        tk = None
        Kp = K

    # Complex weights as two halves of the stacked block matrix
    #   [pr pi] @ [[wr, wi], [-wi, wr]] = [out_real | out_imag]
    # so the patch halves never need to be concatenated.
    wr = w_real.reshape(O, K).T.astype(compute_dtype)
    wi = w_imag.reshape(O, K).T.astype(compute_dtype)

    def _embed(left, right):
        w = jnp.zeros((Kp, two_op), compute_dtype)
        return w.at[:K, :O].set(left).at[:K, Op:Op + O].set(right)

    w_top = _embed(wr, wi)    # multiplies the real patches
    w_bot = _embed(-wi, wr)   # multiplies the imag patches

    out = _complex_mm_pallas(patches, w_top, w_bot, store_dtype, tm=tm, tk=tk)

    out_r = out[..., :O].reshape(B, Ho, Wo, O).transpose(0, 3, 1, 2)
    out_i = out[..., Op:Op + O].reshape(B, Ho, Wo, O).transpose(0, 3, 1, 2)
    return jnp.stack((out_r, out_i), axis=1).astype(out_dtype)


# ------------------------------ reference ------------------------------------

def _reference(x, w_real, w_imag, *, stride=1, padding=0):
    def conv(inp, w):
        return lax.conv_general_dilated(
            inp, w, window_strides=(stride, stride),
            padding=((padding, padding), (padding, padding)),
            dimension_numbers=("NCHW", "OIHW", "NCHW"))
    xr, xi = x[:, 0], x[:, 1]
    out_r = conv(xr, w_real) - conv(xi, w_imag)
    out_i = conv(xi, w_real) + conv(xr, w_imag)
    return jnp.stack((out_r, out_i), axis=1)


# --------------------------------- main ---------------------------------------

if __name__ == "__main__":
    k1, k2, k3, k4, k5, k6 = jax.random.split(jax.random.PRNGKey(0), 6)

    # Case 1: the module's nominal small shapes (single-K-block fast path).
    B, C, H, W = 2, 4, 16, 16
    O, KH, KW = 8, 3, 3
    stride, padding = 1, 1
    x = jax.random.normal(k1, (B, 2, C, H, W), dtype=jnp.float32)
    fan_in = C * KH * KW
    w_real = jax.random.normal(k2, (O, C, KH, KW), jnp.float32) * (fan_in ** -0.5)
    w_imag = jax.random.normal(k3, (O, C, KH, KW), jnp.float32) * (fan_in ** -0.5)

    fwd = jax.jit(functools.partial(conv2d_complex_forward,
                                    stride=stride, padding=padding))
    out = jax.block_until_ready(fwd(x, w_real, w_imag))
    ref = _reference(x, w_real, w_imag, stride=stride, padding=padding)
    assert out.shape == (B, 2, O, H, W), out.shape
    err = float(jnp.max(jnp.abs(out - ref)))
    assert err < 5e-2, err  # bf16 MXU inputs, f32 accumulation over K=36

    # Case 2: exercises the K-tiled accumulator path (forced small threshold),
    # stride=2, padding=0, odd spatial / batch / channel counts.
    B2, C2, H2, W2, O2 = 3, 24, 12, 12, 5
    x2 = jax.random.normal(k4, (B2, 2, C2, H2, W2), dtype=jnp.float32)
    fan2 = C2 * 3 * 3
    wr2 = jax.random.normal(k5, (O2, C2, 3, 3), jnp.float32) * (fan2 ** -0.5)
    wi2 = jax.random.normal(k6, (O2, C2, 3, 3), jnp.float32) * (fan2 ** -0.5)
    fwd2 = jax.jit(functools.partial(conv2d_complex_forward, stride=2, padding=0,
                                     k_split=64, max_tk=128))
    out2 = jax.block_until_ready(fwd2(x2, wr2, wi2))
    ref2 = _reference(x2, wr2, wi2, stride=2, padding=0)
    assert out2.shape == ref2.shape, (out2.shape, ref2.shape)
    err2 = float(jnp.max(jnp.abs(out2 - ref2)))
    assert err2 < 1e-1, err2  # bf16 accumulation over K=216

    print("KERNEL_OK")
</pallas_src>

<mosaic_0001>
module attributes {stable_mosaic.version = 11 : i64} {
  func.func @_complex_mm_kernel(%arg0: i32, %arg1: i32, %arg2: memref<1x2x128x36xbf16, #tpu.memory_space<vmem>>, %arg3: memref<36x128xbf16, #tpu.memory_space<vmem>>, %arg4: memref<36x128xbf16, #tpu.memory_space<vmem>>, %arg5: memref<1x128x128xf32, #tpu.memory_space<vmem>>) attributes {dimension_semantics = [#tpu.dimension_semantics<parallel>, #tpu.dimension_semantics<parallel>], iteration_bounds = array<i64: 2, 2>, scalar_prefetch = 0 : i64, scratch_operands = 0 : i64, tpu.core_type = #tpu.core_type<tc>, window_params = [{transform_indices = @transform_0, window_bounds = array<i64: 1, 2, 128, 36>}, {pipeline_mode = #tpu.pipeline_mode<synchronous>, transform_indices = @transform_1, window_bounds = array<i64: 36, 128>}, {pipeline_mode = #tpu.pipeline_mode<synchronous>, transform_indices = @transform_2, window_bounds = array<i64: 36, 128>}, {transform_indices = @transform_3, window_bounds = array<i64: 1, 128, 128>}]} {
    %c0 = arith.constant 0 : index
    %c0_0 = arith.constant 0 : index
    %c0_1 = arith.constant 0 : index
    %c0_2 = arith.constant 0 : index
    %0 = vector.load %arg2[%c0, %c0_0, %c0_1, %c0_2] : memref<1x2x128x36xbf16, #tpu.memory_space<vmem>>, vector<1x1x128x36xbf16>
    %1 = vector.shape_cast %0 : vector<1x1x128x36xbf16> to vector<128x36xbf16>
    %c0_3 = arith.constant 0 : index
    %c0_4 = arith.constant 0 : index
    %2 = vector.load %arg3[%c0_3, %c0_4] : memref<36x128xbf16, #tpu.memory_space<vmem>>, vector<36x128xbf16>
    %cst = arith.constant dense<0.000000e+00> : vector<128x128xf32>
    %3 = tpu.matmul %1, %2, %cst {dimension_numbers = #tpu.dot_dimension_numbers<[1], [0], [0], [1], [0, 0, 1, 1], [], []>} : vector<128x36xbf16>, vector<36x128xbf16>, vector<128x128xf32> -> vector<128x128xf32>
    %c0_5 = arith.constant 0 : index
    %c1 = arith.constant 1 : index
    %c0_6 = arith.constant 0 : index
    %c0_7 = arith.constant 0 : index
    %4 = vector.load %arg2[%c0_5, %c1, %c0_6, %c0_7] : memref<1x2x128x36xbf16, #tpu.memory_space<vmem>>, vector<1x1x128x36xbf16>
    %5 = vector.shape_cast %4 : vector<1x1x128x36xbf16> to vector<128x36xbf16>
    %c0_8 = arith.constant 0 : index
    %c0_9 = arith.constant 0 : index
    %6 = vector.load %arg4[%c0_8, %c0_9] : memref<36x128xbf16, #tpu.memory_space<vmem>>, vector<36x128xbf16>
    %cst_10 = arith.constant dense<0.000000e+00> : vector<128x128xf32>
    %7 = tpu.matmul %5, %6, %cst_10 {dimension_numbers = #tpu.dot_dimension_numbers<[1], [0], [0], [1], [0, 0, 1, 1], [], []>} : vector<128x36xbf16>, vector<36x128xbf16>, vector<128x128xf32> -> vector<128x128xf32>
    %8 = arith.addf %3, %7 : vector<128x128xf32>
    %c0_11 = arith.constant 0 : index
    %c0_12 = arith.constant 0 : index
    %c0_13 = arith.constant 0 : index
    %9 = vector.load %arg5[%c0_11, %c0_12, %c0_13] : memref<1x128x128xf32, #tpu.memory_space<vmem>>, vector<1x128x128xf32>
    %10 = vector.shape_cast %9 : vector<1x128x128xf32> to vector<128x128xf32>
    %11 = vector.shape_cast %8 : vector<128x128xf32> to vector<1x128x128xf32>
    tpu.vector_store %arg5[%c0_11, %c0_12, %c0_13], %11 {strides = array<i32>} : memref<1x128x128xf32, #tpu.memory_space<vmem>>, vector<1x128x128xf32>,
    return
  }
  func.func @transform_0(%arg0: i32, %arg1: i32) -> (i32, i32, i32, i32) {
    %c0_i32 = arith.constant 0 : i32
    %c0_i32_0 = arith.constant 0 : i32
    %c0_i32_1 = arith.constant 0 : i32
    return %arg0, %c0_i32, %arg1, %c0_i32_0 : i32, i32, i32, i32
  }
  func.func @transform_1(%arg0: i32, %arg1: i32) -> (i32, i32) {
    %c0_i32 = arith.constant 0 : i32
    %c0_i32_0 = arith.constant 0 : i32
    %c0_i32_1 = arith.constant 0 : i32
    return %c0_i32, %c0_i32_0 : i32, i32
  }
  func.func @transform_2(%arg0: i32, %arg1: i32) -> (i32, i32) {
    %c0_i32 = arith.constant 0 : i32
    %c0_i32_0 = arith.constant 0 : i32
    %c0_i32_1 = arith.constant 0 : i32
    return %c0_i32, %c0_i32_0 : i32, i32
  }
  func.func @transform_3(%arg0: i32, %arg1: i32) -> (i32, i32, i32) {
    %c0_i32 = arith.constant 0 : i32
    %c0_i32_0 = arith.constant 0 : i32
    return %arg0, %arg1, %c0_i32 : i32, i32, i32
  }
}

</mosaic_0001>

<bundles_post_ra>
// kernel: conv2d_complex_forward.1
= control target key start
LH: loop header
LB: loop body
LE: loop exit
PB: predicated region body
PF: predicated region fallthrough
CT: control target
= control target key end

     0   :  { %s1171_s12 = smov 0   ;;  %s1173_s13 = smov 0   ;;  %s1349_s0 = inlined_call_operand.vmem [shape: bf16[2,2,256,36], index: 0, kind: input, shape index: {}]   ;;  %s1350_s1 = inlined_call_operand.vmem [shape: bf16[36,128], index: 1, kind: input, shape index: {}]   ;;  %s1351_s2 = inlined_call_operand.vmem [shape: bf16[36,128], index: 2, kind: input, shape index: {}]   ;;  %s1352_s3 = inlined_call_operand.vmem [shape: f32[2,256,128], index: 3, kind: output, shape index: {}]  }
   0x1   :  { %s1175_s14 = smov 0   ;;  %s1177_s15 = smov 0  }
   0x2   :  { %s1179_s16 = smov 0   ;;  %s1181_s17 = smov 0  }
   0x3   :  { %s1183_s18 = smov 0  }
   0x4 LB: > { %s22_s19 = sadd.s32 1, %s1141_s16  ;;  %s25_s20 = sadd.s32 1, %s1145_s17  ;;  %s1149_s18 = sphi %s1183_s18, %s13_s18   ;;  %s1145_s17 = sphi %s1181_s17, %s1358_s17   ;;  %s1141_s16 = sphi %s1179_s16, %s1357_s16   ;;  %s1137_s15 = sphi %s1177_s15, %s1356_s15   ;;  %s1133_s14 = sphi %s1175_s14, %s1355_s14   ;;  %s1129_s13 = sphi %s1173_s13, %s1354_s13   ;;  %s1125_s12 = sphi %s1171_s12, %s1353_s12  }
   0x5   : > { %p23_p0 = scmp.ge.s32.totalorder %s22_s19, 2  ;;  %p41_p1 = scmp.ne.s32.totalorder %s1129_s13, %s1125_s12 }
   0x6   : > { %p42_p2 = scmp.eq.s32.totalorder %s1149_s18, 0  ;;  %s34_s24 = sadd.s32 1, %s1129_s13 }
   0x7   : > { %s1360_s19 = smov (%p23_p0, %s22_s19), 0  ;;  %s1362_s20 = smov (!%p23_p0, %s25_s20), %s1145_s17 }
   0x8   : > { %p43_p3 = por %p42_p2, %p41_p1  ;;  %p27_p4 = scmp.ge.s32.totalorder %s1362_s20, 2 }
   0x9   : > { %s30_s21 = ssub.s32 %s1141_s16, %s1360_s19  ;;  %p883_p6 = scmp.ge.s32.totalorder %s1149_s18, 4 }
   0xa   : > { %s1364_s20 = smov (%p27_p4, %s1362_s20), 0 }
   0xb   : > { %s29_s22 = ssub.s32 %s1145_s17, %s1364_s20  ;;  %143 = sbr.rel (%p883_p6) target bundleno = 31 (0x1f), region = 24 }
   0xc   : > { %s31_s23 = sor.u32 %s30_s21, %s29_s22 }
   0xd   : > { %p32_p5 = scmp.eq.s32.totalorder %s31_s23, 0 }
   0xf   : > { %s1222_s25 = scalar_select %p32_p5, %s1129_s13, %s34_s24  }
  0x10   : > { %146 = sbr.rel (!%p43_p3) target bundleno = 31 (0x1f), region = 28  ;;  %s148_s26 = sand.u32 (%p43_p3), 1, %s1129_s13  }
  0x11   : > { %s885_s27 = sshll.u32 (%p43_p3), %s1141_s16, 4  ;;  %s884_s28 = sshll.u32 (%p43_p3), %s148_s26, 7 }
  0x12   : > { %s886_s29 = sshll.u32 (%p43_p3), %s1145_s17, 6  ;;  %s150_s8 = scalar_lea.vmem (%p43_p3), [#allocation2], %s884_s28 }
  0x13   : > { %s153_s30 = sadd.s32 (%p43_p3), %s886_s29, %s885_s27 }
  0x14   : > { %s887_s4 = sshll.u32 (%p43_p3), %s153_s30, 2 }
  0x15   : > { %s1231_s7 = scalar_lea.vmem %s1349_s0, %s887_s4 }
  0x16   : > { %v172_v0 = vld [vmem:[%s1231_s7] sm:$0xff]   ;;  %v176_v1 = vld [vmem:[%s1231_s7 + $0x8] sm:$0xff]   ;;  %v180_v2 = vld [vmem:[%s1231_s7 + $0x10] sm:$0xff]  }
  0x17   : > { %173 = vst [vmem:[%s150_s8] sm:$0xff] %v172_v0   ;;  %177 = vst [vmem:[%s150_s8 + $0x8] sm:$0xff] %v176_v1   ;;  %v184_v3 = vld [vmem:[%s1231_s7 + $0x18] sm:$0xff]   ;;  %v188_v4 = vld [vmem:[%s1231_s7 + $0x20] sm:$0xff]  }
  0x18   : > { %181 = vst [vmem:[%s150_s8 + $0x10] sm:$0xff] %v180_v2   ;;  %v192_v5 = vld [vmem:[%s1231_s7 + $0x28] sm:$0xff]   ;;  %185 = vst [vmem:[%s150_s8 + $0x18] sm:$0xff] %v184_v3   ;;  %v196_v6 = vld [vmem:[%s1231_s7 + $0x30] sm:$0xff]  }
  0x19   : > { %189 = vst [vmem:[%s150_s8 + $0x20] sm:$0xff] %v188_v4   ;;  %193 = vst [vmem:[%s150_s8 + $0x28] sm:$0xff] %v192_v5   ;;  %v200_v7 = vld [vmem:[%s1231_s7 + $0x38] sm:$0xff]   ;;  %v204_v8 = vld [vmem:[%s1231_s7 + $0x80] sm:$0xff]  }
  0x1a   : > { %197 = vst [vmem:[%s150_s8 + $0x30] sm:$0xff] %v196_v6   ;;  %201 = vst [vmem:[%s150_s8 + $0x38] sm:$0xff] %v200_v7   ;;  %v208_v9 = vld [vmem:[%s1231_s7 + $0x88] sm:$0xff]   ;;  %v212_v10 = vld [vmem:[%s1231_s7 + $0x90] sm:$0xff]  }
  0x1b   : > { %205 = vst [vmem:[%s150_s8 + $0x40] sm:$0xff] %v204_v8   ;;  %v216_v11 = vld [vmem:[%s1231_s7 + $0x98] sm:$0xff]   ;;  %209 = vst [vmem:[%s150_s8 + $0x48] sm:$0xff] %v208_v9   ;;  %v220_v12 = vld [vmem:[%s1231_s7 + $0xa0] sm:$0xff]  }
  0x1c   : > { %213 = vst [vmem:[%s150_s8 + $0x50] sm:$0xff] %v212_v10   ;;  %217 = vst [vmem:[%s150_s8 + $0x58] sm:$0xff] %v216_v11   ;;  %v224_v13 = vld [vmem:[%s1231_s7 + $0xa8] sm:$0xff]   ;;  %v228_v14 = vld [vmem:[%s1231_s7 + $0xb0] sm:$0xff]  }
  0x1d   : > { %221 = vst [vmem:[%s150_s8 + $0x60] sm:$0xff] %v220_v12   ;;  %225 = vst [vmem:[%s150_s8 + $0x68] sm:$0xff] %v224_v13   ;;  %v232_v15 = vld [vmem:[%s1231_s7 + $0xb8] sm:$0xff]  }
  0x1e   : > { %229 = vst [vmem:[%s150_s8 + $0x70] sm:$0xff] %v228_v14   ;;  %233 = vst [vmem:[%s150_s8 + $0x78] sm:$0xff] %v232_v15  }
  0x1f PF: > { %p888_p7 = scmp.ge.s32.totalorder %s1149_s18, 1  ;;  %p322_p8 = scmp.lt.s32.totalorder %s1149_s18, 5 }
  0x21   : > { %p323_p9 = pnand %p888_p7, %p322_p8 }
  0x22   : > { %s329_s4 = sand.u32 (!%p323_p9), 1, %s1125_s12   ;;  %s890_s12 = sshll.u32 (!%p323_p9), %s1133_s14, 4 }
  0x23   : > { %326 = sbr.rel (%p323_p9) target bundleno = 280 (0x118), region = 69  ;;  %s889_s5 = sshll.u32 (!%p323_p9), %s329_s4, 7 }
  0x24   : > { %s1270_s6 = scalar_lea.vmem (!%p323_p9), [#allocation2], %s889_s5  ;;  %p358_p10 = scmp.lt.s32.totalorder (!%p323_p9), %s1137_s15, 1 }
  0x25   : > { %p360_p11 = scmp.lt.s32.totalorder (!%p323_p9), %s890_s12, 31 }
  0x28   : > { %v1073_v16 = vld [vmem:[%s1351_s2 + $0x10] ss:$0 sps:$4 sm:$0x33]   ;;  %vm491_vm0 = vcmask 1041408   ;;  %v1075_v18 = vld [vmem:[%s1351_s2 + $0x8] sm:$0xff]   ;;  %v1077_v22 = vld [vmem:[%s1351_s2] sm:$0xff]  }
  0x29   : > { %v1074_v17 = vld [vmem:[%s1350_s1 + $0x10] ss:$0 sps:$4 sm:$0x33]   ;;  %1015 = vmatprep.subr.msk.bf16.mxu0 %vm491_vm0, %v1073_v16  ;;  %v493_v19 = vsel %vm491_vm0, %v1073_v16, 0  ;;  %v1076_v20 = vld [vmem:[%s1350_s1 + $0x8] sm:$0xff]   ;;  %v1078_v23 = vld [vmem:[%s1350_s1] sm:$0xff]  }
  0x2a   : > { %1016 = vmatprep.subr.msk.bf16.mxu1 %vm491_vm0, %v1074_v17  ;;  %972 = vmatpush3.bf16.msra.mxu0 %v493_v19  ;;  %v672_v21 = vsel %vm491_vm0, %v1074_v17, 0  ;;  %vm466_vm1 = vcmask 293888   ;;  %v1079_v24 = vld [vmem:[%s1270_s6 + $0x40] sm:$0xff]   ;;  %v1081_v26 = vld [vmem:[%s1270_s6 + $0x48] sm:$0xff]   ;;  %v1083_v28 = vld [vmem:[%s1270_s6 + $0x50] sm:$0xff]   ;;  %s1366_s15 = smov (!%p358_p10, %s1137_s15), 1 }
  0x2b   : > { %994 = vmatpush3.bf16.msra.mxu1 %v672_v21  ;;  %973 = vmatprep.subr.bf16.mxu0 %v1075_v18  ;;  %v1080_v25 = vld [vmem:[%s1270_s6] sm:$0xff]   ;;  %v1082_v27 = vld [vmem:[%s1270_s6 + $0x8] sm:$0xff]   ;;  %v1084_v29 = vld [vmem:[%s1270_s6 + $0x10] sm:$0xff]   ;;  %s1368_s12 = smov (!%p360_p11, %s890_s12), 31  ;;  %s891_s7 = sshll.u32 %s1366_s15, 5 }
  0x2c   : > { %995 = vmatprep.subr.bf16.mxu1 %v1076_v20  ;;  %977 = vmatprep.mubr.msk.bf16.mxu0 %vm466_vm1, %v1079_v24  ;;  %v1085_v30 = vld [vmem:[%s1270_s6 + $0x58] sm:$0xff]   ;;  %v1087_v32 = vld [vmem:[%s1270_s6 + $0x60] sm:$0xff]   ;;  %v1089_v34 = vld [vmem:[%s1270_s6 + $0x68] sm:$0xff]   ;;  %s363_s8 = sadd.s32 %s891_s7, %s1368_s12 }
  0x2d   : > { %999 = vmatprep.mubr.msk.bf16.mxu1 %vm466_vm1, %v1080_v25  ;;  %v1086_v31 = vld [vmem:[%s1270_s6 + $0x18] sm:$0xff]   ;;  %v1088_v33 = vld [vmem:[%s1270_s6 + $0x20] sm:$0xff]   ;;  %v1090_v35 = vld [vmem:[%s1270_s6 + $0x28] sm:$0xff]   ;;  %s892_s9 = sshll.u32 %s363_s8, 3 }
  0x2e   : > { %974 = vmatpush3.bf16.msra.mxu0 %v1075_v18  ;;  %v1091_v36 = vld [vmem:[%s1270_s6 + $0x70] sm:$0xff]   ;;  %v1093_v38 = vld [vmem:[%s1270_s6 + $0x78] sm:$0xff]   ;;  %s1310_s21 = scalar_lea.vmem %s1352_s3, %s892_s9 }
  0x2f   : > { %996 = vmatpush3.bf16.msra.mxu1 %v1076_v20  ;;  %975 = vmatprep.subr.bf16.mxu0 %v1077_v22  ;;  %v1092_v37 = vld [vmem:[%s1270_s6 + $0x30] sm:$0xff]   ;;  %v1094_v39 = vld [vmem:[%s1270_s6 + $0x38] sm:$0xff]  }
  0x30   : > { %997 = vmatprep.subr.bf16.mxu1 %v1078_v23 }
  0x32   : > { %976 = vmatpush3.bf16.msra.mxu0 %v1077_v22 }
  0x33   : > { %998 = vmatpush3.bf16.msra.mxu1 %v1078_v23 }
  0x35   : > { %978 = vmatmul.mubr.msk.bf16.vlgmr.msra.gmra.mxu0 %vm466_vm1, %v1081_v26 }
  0x36   : > { %1000 = vmatmul.mubr.msk.bf16.vlgmr.msra.gmra.mxu1 %vm466_vm1, %v1082_v27  ;;  %981 = vmatprep.mubr.msk.bf16.mxu0 %vm466_vm1, %v1083_v28 }
  0x37   : > { %1003 = vmatprep.mubr.msk.bf16.mxu1 %vm466_vm1, %v1084_v29 }
  0x3d   : > { %982 = vmatmul.mubr.msk.bf16.gmra.mxu0 %vm466_vm1, %v1085_v30 }
  0x3e   : > { %1004 = vmatmul.mubr.msk.bf16.gmra.mxu1 %vm466_vm1, %v1086_v31  ;;  %985 = vmatprep.mubr.msk.bf16.mxu0 %vm466_vm1, %v1087_v32 }
  0x3f   : > { %1007 = vmatprep.mubr.msk.bf16.mxu1 %vm466_vm1, %v1088_v33 }
  0x45   : > { %986 = vmatmul.mubr.msk.bf16.gmra.mxu0 %vm466_vm1, %v1089_v34 }
  0x46   : > { %1008 = vmatmul.mubr.msk.bf16.gmra.mxu1 %vm466_vm1, %v1090_v35  ;;  %989 = vmatprep.mubr.msk.bf16.mxu0 %vm466_vm1, %v1091_v36 }
  0x47   : > { %1011 = vmatprep.mubr.msk.bf16.mxu1 %vm466_vm1, %v1092_v37 }
  0x4d   : > { %990 = vmatmul.mubr.msk.bf16.gmra.mxu0 %vm466_vm1, %v1093_v38 }
  0x4e   : > { %1012 = vmatmul.mubr.msk.bf16.gmra.mxu1 %vm466_vm1, %v1094_v39 }
  0xf5   : > { %v979_v40 = vpop.f32.mrf.mxu0 }
  0xf6   : > { %v1001_v41 = vpop.f32.mrf.mxu1 }
  0xf7   : > { %v717_v42 = vadd.f32 %v1001_v41, %v979_v40  ;;  %v529_v43 = vpop.f32.mrf.mxu0 }
  0xf8   : > { %v708_v44 = vpop.f32.mrf.mxu1 }
  0xf9   : > { %773 = vst [vmem:[%s1310_s21 + $0x10] sm:$0xff] %v717_v42  ;;  %v709_v45 = vadd.f32 %v708_v44, %v529_v43  ;;  %v980_v46 = vpop.f32.mrf.mxu0 }
  0xfa   : > { %v1002_v47 = vpop.f32.mrf.mxu1 }
  0xfb   : > { %771 = vst [vmem:[%s1310_s21] sm:$0xff] %v709_v45  ;;  %v720_v48 = vadd.f32 %v1002_v47, %v980_v46  ;;  %v532_v49 = vpop.f32.mrf.mxu0 }
  0xfc   : > { %v711_v50 = vpop.f32.mrf.mxu1 }
  0xfd   : > { %774 = vst [vmem:[%s1310_s21 + $0x18] sm:$0xff] %v720_v48  ;;  %v712_v51 = vadd.f32 %v711_v50, %v532_v49  ;;  %v983_v52 = vpop.f32.mrf.mxu0 }
  0xfe   : > { %v1005_v53 = vpop.f32.mrf.mxu1 }
  0xff   : > { %772 = vst [vmem:[%s1310_s21 + $0x8] sm:$0xff] %v712_v51  ;;  %v733_v54 = vadd.f32 %v1005_v53, %v983_v52  ;;  %v545_v55 = vpop.f32.mrf.mxu0 }
 0x100   : > { %v724_v56 = vpop.f32.mrf.mxu1 }
 0x101   : > { %777 = vst [vmem:[%s1310_s21 + $0x30] sm:$0xff] %v733_v54  ;;  %v725_v57 = vadd.f32 %v724_v56, %v545_v55  ;;  %v984_v58 = vpop.f32.mrf.mxu0 }
 0x102   : > { %v1006_v59 = vpop.f32.mrf.mxu1 }
 0x103   : > { %775 = vst [vmem:[%s1310_s21 + $0x20] sm:$0xff] %v725_v57  ;;  %v736_v60 = vadd.f32 %v1006_v59, %v984_v58  ;;  %v548_v61 = vpop.f32.mrf.mxu0 }
 0x104   : > { %v727_v62 = vpop.f32.mrf.mxu1 }
 0x105   : > { %778 = vst [vmem:[%s1310_s21 + $0x38] sm:$0xff] %v736_v60  ;;  %v728_v63 = vadd.f32 %v727_v62, %v548_v61  ;;  %v987_v0 = vpop.f32.mrf.mxu0 }
 0x106   : > { %v1009_v1 = vpop.f32.mrf.mxu1 }
 0x107   : > { %776 = vst [vmem:[%s1310_s21 + $0x28] sm:$0xff] %v728_v63  ;;  %v749_v2 = vadd.f32 %v1009_v1, %v987_v0  ;;  %v561_v3 = vpop.f32.mrf.mxu0 }
 0x108   : > { %v740_v4 = vpop.f32.mrf.mxu1 }
 0x109   : > { %781 = vst [vmem:[%s1310_s21 + $0x50] sm:$0xff] %v749_v2  ;;  %v741_v5 = vadd.f32 %v740_v4, %v561_v3  ;;  %v988_v6 = vpop.f32.mrf.mxu0 }
 0x10a   : > { %v1010_v7 = vpop.f32.mrf.mxu1 }
 0x10b   : > { %779 = vst [vmem:[%s1310_s21 + $0x40] sm:$0xff] %v741_v5  ;;  %v752_v8 = vadd.f32 %v1010_v7, %v988_v6  ;;  %v564_v9 = vpop.f32.mrf.mxu0 }
 0x10c   : > { %v743_v10 = vpop.f32.mrf.mxu1 }
 0x10d   : > { %782 = vst [vmem:[%s1310_s21 + $0x58] sm:$0xff] %v752_v8  ;;  %v744_v11 = vadd.f32 %v743_v10, %v564_v9  ;;  %v991_v12 = vpop.f32.mrf.mxu0 }
 0x10e   : > { %v1013_v13 = vpop.f32.mrf.mxu1 }
 0x10f   : > { %780 = vst [vmem:[%s1310_s21 + $0x48] sm:$0xff] %v744_v11  ;;  %v765_v14 = vadd.f32 %v1013_v13, %v991_v12  ;;  %v577_v15 = vpop.f32.mrf.mxu0 }
 0x110   : > { %v756_v16 = vpop.f32.mrf.mxu1 }
 0x111   : > { %785 = vst [vmem:[%s1310_s21 + $0x70] sm:$0xff] %v765_v14  ;;  %v757_v17 = vadd.f32 %v756_v16, %v577_v15  ;;  %v992_v18 = vpop.f32.mrf.mxu0 }
 0x112   : > { %v1014_v19 = vpop.f32.mrf.mxu1 }
 0x113   : > { %783 = vst [vmem:[%s1310_s21 + $0x60] sm:$0xff] %v757_v17  ;;  %v768_v20 = vadd.f32 %v1014_v19, %v992_v18  ;;  %v580_v21 = vpop.f32.mrf.mxu0 }
 0x114   : > { %v759_v22 = vpop.f32.mrf.mxu1 }
 0x115   : > { %786 = vst [vmem:[%s1310_s21 + $0x78] sm:$0xff] %v768_v20  ;;  %v760_v23 = vadd.f32 %v759_v22, %v580_v21 }
 0x117   : > { %784 = vst [vmem:[%s1310_s21 + $0x68] sm:$0xff] %v760_v23 }
 0x118 PF: > { %s13_s18 = sadd.s32 1, %s1149_s18   ;;  %s1353_s12 = smov %s1129_s13 }
 0x119   : > { %p10_p12 = scmp.ge.s32.totalorder %s13_s18, 6   ;;  %s1354_s13 = smov %s1222_s25 }
 0x11a   : > { %s1355_s14 = smov %s1141_s16  ;;  %s1356_s15 = smov %s1145_s17 }
 0x11b   : > { %s1357_s16 = smov %s1360_s19  ;;  %s1358_s17 = smov %s1364_s20 }
 0x11c   :  { %12 = sbr.rel (!%p10_p12) target bundleno = 4 (0x4), region = 109 }

</bundles_post_ra>
